<compile_context>
chip_gen: v7x
topology: tpu7x:2x2x1
jax: 0.10.0
libtpu: 0.0.40
codegen_flags: <defaults>
</compile_context>

<pallas_src>
import functools

import jax
import jax.numpy as jnp
from jax import lax
from jax.experimental import pallas as pl
from jax.experimental.pallas import tpu as pltpu

_LANE = 128  # lane-dense padding for the tiny z_dim output


def _conv1d_same_relu_im2col(x, wcat, b, pos, *, L, K, compute_dtype):
    """'same' Conv1d + ReLU over a batch-folded activation slab.

    x:    (R, Cin) f32 with R = batch_tile * L (consecutive examples stacked)
    wcat: (K*Cin, Cout) in compute_dtype -- conv kernel reshaped for im2col
    b:    (1, Cout) f32
    pos:  (R, 1) int32 row position inside its example (hoisted by caller)
    Returns (R, Cout) f32.

    Equivalent to torch.nn.Conv1d(Cin, Cout, K, padding=(K-1)//2) applied to
    each length-L example independently, followed by ReLU.  Shifted rows that
    would read outside a sequence (including across the folded example
    boundary) are zero-masked.
    """
    R, _ = x.shape
    pad = (K - 1) // 2
    pieces = []
    for k in range(K):
        d = k - pad  # out[t] += x[t + d] @ w[k], zero outside [0, L)
        if d == 0:
            pieces.append(x)
        else:
            # pltpu.roll has jnp.roll semantics: shifted[r] = x[(r + d) % R]
            shifted = pltpu.roll(x, shift=(-d) % R, axis=0)
            valid = jnp.logical_and(pos + d >= 0, pos + d < L)   # (R, 1), lane-broadcast
            pieces.append(jnp.where(valid, shifted, 0.0))
    xcat = jnp.concatenate(pieces, axis=1) if K > 1 else pieces[0]   # (R, K*Cin)
    acc = jnp.dot(xcat.astype(compute_dtype), wcat,
                  preferred_element_type=jnp.float32)                # one MXU call
    return jnp.maximum(acc + b, 0.0)


def _generator_kernel(x_ref, w1_ref, b1_ref, w2_ref, b2_ref, wo_ref, bo_ref,
                      out_ref, *, L, K, compute_dtype):
    x = x_ref[...]                                             # (R, E) f32
    R = x.shape[0]
    # Row position inside its example; computed ONCE and shared by both conv
    # layers (width-1 iota -> negligible VALU work, broadcast along lanes free).
    pos = lax.broadcasted_iota(jnp.int32, (R, 1), 0) % L if K > 1 else None
    h = _conv1d_same_relu_im2col(x, w1_ref[...], b1_ref[...], pos,
                                 L=L, K=K, compute_dtype=compute_dtype)
    h = _conv1d_same_relu_im2col(h, w2_ref[...], b2_ref[...], pos,
                                 L=L, K=K, compute_dtype=compute_dtype)
    scores = jnp.dot(h.astype(compute_dtype), wo_ref[...],
                     preferred_element_type=jnp.float32) + bo_ref[...]
    out_ref[...] = scores                                      # (R, 128) lane-dense


def _pick_batch_tile(B, L, target_rows):
    """Largest divisor Bt of B with Bt*L <= target_rows, keeping >=2 grid steps
    when possible (so both v7x TensorCores get work) and sublane-aligned rows."""
    divisors = [d for d in range(1, B + 1) if B % d == 0]
    fits = [d for d in divisors
            if d * L <= target_rows and ((d * L) % 8 == 0 or d == B)]
    if not fits:
        return B  # whole batch in one step; block == full array is always legal
    two_step = [d for d in fits if B // d >= 2]
    return max(two_step) if two_step else max(fits)


@functools.partial(jax.jit, static_argnames=("compute_dtype", "target_rows"))
def generator_forward(x, params, *, compute_dtype=jnp.bfloat16, target_rows=512):
    """Pallas forward. x: (B, L, E) f32 -> scores (B, L, Z) f32."""
    w1, b1, w2, b2, wo, bo = params   # (K,E,H),(1,H),(K,H,H),(1,H),(H,Z),(1,Z)
    B, L, E = x.shape
    K, _, H = w1.shape
    Z = wo.shape[1]
    assert K % 2 == 1, "padding='same' reproduction requires odd kernel_size"

    # im2col weight layout + lane-dense padding of the tiny output head.
    w1c = w1.reshape(K * E, H).astype(compute_dtype)
    w2c = w2.reshape(K * H, H).astype(compute_dtype)
    wop = jnp.zeros((H, _LANE), jnp.float32).at[:, :Z].set(wo).astype(compute_dtype)
    bop = jnp.zeros((1, _LANE), jnp.float32).at[:, :Z].set(bo)

    bt = _pick_batch_tile(B, L, target_rows)
    R = bt * L
    xf = x.reshape(B * L, E)          # fold batch into the sublane axis

    kernel = functools.partial(_generator_kernel, L=L, K=K,
                               compute_dtype=compute_dtype)
    grid_spec = pltpu.PrefetchScalarGridSpec(
        num_scalar_prefetch=0,
        grid=(B // bt,),
        in_specs=[
            pl.BlockSpec((R, E), lambda i: (i, 0)),         # folded activations
            pl.BlockSpec((K * E, H), lambda i: (0, 0)),     # conv1 weight (im2col)
            pl.BlockSpec((1, H), lambda i: (0, 0)),         # conv1 bias
            pl.BlockSpec((K * H, H), lambda i: (0, 0)),     # conv2 weight (im2col)
            pl.BlockSpec((1, H), lambda i: (0, 0)),         # conv2 bias
            pl.BlockSpec((H, _LANE), lambda i: (0, 0)),     # output weight (padded)
            pl.BlockSpec((1, _LANE), lambda i: (0, 0)),     # output bias (padded)
        ],
        out_specs=pl.BlockSpec((R, _LANE), lambda i: (i, 0)),
    )
    out = pl.pallas_call(
        kernel,
        out_shape=jax.ShapeDtypeStruct((B * L, _LANE), jnp.float32),
        grid_spec=grid_spec,
        compiler_params=pltpu.CompilerParams(
            dimension_semantics=("parallel",)),
        # NOTE: at production B/L, cap R (target_rows) so the (R, K*H) slab +
        # weights stay well under v7x's 64 MiB VMEM (set vmem_limit_bytes
        # explicitly if scaled up).
    )(xf, w1c, b1, w2c, b2, wop, bop)
    return out[:, :Z].reshape(B, L, Z)


def reference_forward(x, params):
    """Pure-JAX reference matching the PyTorch module semantics (f32)."""
    w1, b1, w2, b2, wo, bo = params

    def conv(xin, w, b):
        K = w.shape[0]
        pad = (K - 1) // 2
        L = xin.shape[1]
        xp = jnp.pad(xin, ((0, 0), (pad, pad), (0, 0)))
        acc = jnp.zeros((xin.shape[0], L, w.shape[2]), jnp.float32)
        for k in range(K):
            acc = acc + jnp.einsum('blc,ch->blh', xp[:, k:k + L, :], w[k])
        return jnp.maximum(acc + b[None, :, :], 0.0)

    h = conv(x, w1, b1)
    h = conv(h, w2, b2)
    return jnp.einsum('blh,hz->blz', h, wo) + bo[None, :, :]


def init_params(key, embedding_dim, hidden_dim, kernel_size, z_dim):
    """Deterministic parameter init (torch Conv1d/Linear shapes, re-laid out)."""
    ks = jax.random.split(key, 6)
    # torch Conv1d weight: (Cout, Cin, K)  -> kernel layout (K, Cin, Cout)
    w1_t = jax.random.normal(ks[0], (hidden_dim, embedding_dim, kernel_size),
                             jnp.float32) * 0.1
    b1_t = jax.random.normal(ks[1], (hidden_dim,), jnp.float32) * 0.1
    w2_t = jax.random.normal(ks[2], (hidden_dim, hidden_dim, kernel_size),
                             jnp.float32) * 0.1
    b2_t = jax.random.normal(ks[3], (hidden_dim,), jnp.float32) * 0.1
    # torch Linear weight: (z_dim, hidden_dim) -> kernel layout (hidden_dim, z_dim)
    wo_t = jax.random.normal(ks[4], (z_dim, hidden_dim), jnp.float32) * 0.1
    bo_t = jax.random.normal(ks[5], (z_dim,), jnp.float32) * 0.1

    w1 = jnp.transpose(w1_t, (2, 1, 0))          # (K, E, H)
    b1 = b1_t.reshape(1, hidden_dim)
    w2 = jnp.transpose(w2_t, (2, 1, 0))          # (K, H, H)
    b2 = b2_t.reshape(1, hidden_dim)
    wo = jnp.transpose(wo_t, (1, 0))             # (H, Z)
    bo = bo_t.reshape(1, z_dim)
    return (w1, b1, w2, b2, wo, bo)


if __name__ == "__main__":
    # args: model_type="CNN", z_dim=2, hidden_dim=32, embedding_dim=16,
    #       kernel_size=3, layer_num=2
    B, L, E, H, K, Z = 4, 16, 16, 32, 3, 2
    key = jax.random.PRNGKey(0)
    kx, kp = jax.random.split(key)
    x = jax.random.normal(kx, (B, L, E), jnp.float32)
    params = init_params(kp, E, H, K, Z)

    # f32 path: exact check vs reference (also validates roll/boundary masking).
    scores_f32 = generator_forward(x, params, compute_dtype=jnp.float32)
    # bf16 path: production MXU configuration (f32 accumulation), looser check.
    scores_bf16 = generator_forward(x, params, compute_dtype=jnp.bfloat16)
    scores_f32, scores_bf16 = jax.block_until_ready((scores_f32, scores_bf16))

    ref = reference_forward(x, params)
    assert scores_f32.shape == (B, L, Z)
    assert scores_bf16.shape == (B, L, Z)
    assert jnp.allclose(scores_f32, ref, atol=1e-4, rtol=1e-4), "f32 mismatch"
    assert jnp.allclose(scores_bf16, ref, atol=3e-2, rtol=3e-2), "bf16 mismatch"

    # TODO(synk): RNN variant (GRU/LSTM CellType) of generator_model not implemented;
    # only the CNN path is covered. The optional `mask` argument is unused by the
    # CNN path and is ignored here.
    print("KERNEL_OK")
</pallas_src>

<mosaic_0001>
module attributes {stable_mosaic.version = 11 : i64} {
  func.func @_generator_kernel(%arg0: i32, %arg1: memref<32x16xf32, #tpu.memory_space<vmem>>, %arg2: memref<48x32xf32, #tpu.memory_space<vmem>>, %arg3: memref<1x32xf32, #tpu.memory_space<vmem>>, %arg4: memref<96x32xf32, #tpu.memory_space<vmem>>, %arg5: memref<1x32xf32, #tpu.memory_space<vmem>>, %arg6: memref<32x128xf32, #tpu.memory_space<vmem>>, %arg7: memref<1x128xf32, #tpu.memory_space<vmem>>, %arg8: memref<32x128xf32, #tpu.memory_space<vmem>>) attributes {dimension_semantics = [#tpu.dimension_semantics<parallel>], iteration_bounds = array<i64: 2>, scalar_prefetch = 0 : i64, scratch_operands = 0 : i64, tpu.core_type = #tpu.core_type<tc>, window_params = [{transform_indices = @transform_0, window_bounds = array<i64: 32, 16>}, {pipeline_mode = #tpu.pipeline_mode<synchronous>, transform_indices = @transform_1, window_bounds = array<i64: 48, 32>}, {pipeline_mode = #tpu.pipeline_mode<synchronous>, transform_indices = @transform_2, window_bounds = array<i64: 1, 32>}, {pipeline_mode = #tpu.pipeline_mode<synchronous>, transform_indices = @transform_3, window_bounds = array<i64: 96, 32>}, {pipeline_mode = #tpu.pipeline_mode<synchronous>, transform_indices = @transform_4, window_bounds = array<i64: 1, 32>}, {pipeline_mode = #tpu.pipeline_mode<synchronous>, transform_indices = @transform_5, window_bounds = array<i64: 32, 128>}, {pipeline_mode = #tpu.pipeline_mode<synchronous>, transform_indices = @transform_6, window_bounds = array<i64: 1, 128>}, {transform_indices = @transform_7, window_bounds = array<i64: 32, 128>}]} {
    %c0 = arith.constant 0 : index
    %c0_0 = arith.constant 0 : index
    %0 = vector.load %arg1[%c0, %c0_0] : memref<32x16xf32, #tpu.memory_space<vmem>>, vector<32x16xf32>
    %1 = tpu.iota {dimensions = array<i32: 0>} : vector<32x1xi32>
    %c16_i32 = arith.constant 16 : i32
    %c0_i32 = arith.constant 0 : i32
    %2 = arith.cmpi eq, %c16_i32, %c0_i32 : i32
    %c1_i32 = arith.constant 1 : i32
    %3 = arith.select %2, %c1_i32, %c16_i32 : i32
    %4 = vector.broadcast %3 : i32 to vector<32x1xi32>
    %5 = arith.remsi %1, %4 : vector<32x1xi32>
    %c0_i32_1 = arith.constant 0 : i32
    %6 = vector.broadcast %c0_i32_1 : i32 to vector<32x1xi32>
    %7 = arith.cmpi ne, %5, %6 : vector<32x1xi32>
    %c0_i32_2 = arith.constant 0 : i32
    %8 = vector.broadcast %c0_i32_2 : i32 to vector<32x1xi32>
    %9 = arith.cmpi slt, %5, %8 : vector<32x1xi32>
    %c0_i32_3 = arith.constant 0 : i32
    %10 = arith.cmpi slt, %3, %c0_i32_3 : i32
    %11 = vector.broadcast %10 : i1 to vector<32x1xi1>
    %12 = vector.broadcast %11 : vector<32x1xi1> to vector<32x1xi1>
    %13 = arith.xori %9, %12 : vector<32x1xi1>
    %14 = arith.andi %13, %7 : vector<32x1xi1>
    %15 = vector.broadcast %3 : i32 to vector<32x1xi32>
    %16 = arith.addi %5, %15 : vector<32x1xi32>
    %17 = arith.select %14, %16, %5 : vector<32x1xi1>, vector<32x1xi32>
    %c0_4 = arith.constant 0 : index
    %c0_5 = arith.constant 0 : index
    %18 = vector.load %arg2[%c0_4, %c0_5] : memref<48x32xf32, #tpu.memory_space<vmem>>, vector<48x32xf32>
    %c0_6 = arith.constant 0 : index
    %c0_7 = arith.constant 0 : index
    %19 = vector.load %arg3[%c0_6, %c0_7] : memref<1x32xf32, #tpu.memory_space<vmem>>, vector<1x32xf32>
    %c1_i32_8 = arith.constant 1 : i32
    %20 = tpu.dynamic_rotate %0 by %c1_i32_8 dim 0 : vector<32x16xf32>, i32 -> vector<32x16xf32>
    %c-1_i32 = arith.constant -1 : i32
    %21 = vector.broadcast %c-1_i32 : i32 to vector<32x1xi32>
    %22 = arith.addi %17, %21 : vector<32x1xi32>
    %c0_i32_9 = arith.constant 0 : i32
    %23 = vector.broadcast %c0_i32_9 : i32 to vector<32x1xi32>
    %24 = arith.cmpi sge, %22, %23 : vector<32x1xi32>
    %c-1_i32_10 = arith.constant -1 : i32
    %25 = vector.broadcast %c-1_i32_10 : i32 to vector<32x1xi32>
    %26 = arith.addi %17, %25 : vector<32x1xi32>
    %c16_i32_11 = arith.constant 16 : i32
    %27 = vector.broadcast %c16_i32_11 : i32 to vector<32x1xi32>
    %28 = arith.cmpi slt, %26, %27 : vector<32x1xi32>
    %29 = arith.andi %24, %28 : vector<32x1xi1>
    %cst = arith.constant 0.000000e+00 : f32
    %30 = vector.shape_cast %29 : vector<32x1xi1> to vector<32x1xi1>
    %31 = vector.broadcast %30 : vector<32x1xi1> to vector<32x16xi1>
    %32 = vector.broadcast %cst : f32 to vector<32x16xf32>
    %33 = arith.select %31, %20, %32 : vector<32x16xi1>, vector<32x16xf32>
    %c31_i32 = arith.constant 31 : i32
    %34 = tpu.dynamic_rotate %0 by %c31_i32 dim 0 : vector<32x16xf32>, i32 -> vector<32x16xf32>
    %c1_i32_12 = arith.constant 1 : i32
    %35 = vector.broadcast %c1_i32_12 : i32 to vector<32x1xi32>
    %36 = arith.addi %17, %35 : vector<32x1xi32>
    %c0_i32_13 = arith.constant 0 : i32
    %37 = vector.broadcast %c0_i32_13 : i32 to vector<32x1xi32>
    %38 = arith.cmpi sge, %36, %37 : vector<32x1xi32>
    %c1_i32_14 = arith.constant 1 : i32
    %39 = vector.broadcast %c1_i32_14 : i32 to vector<32x1xi32>
    %40 = arith.addi %17, %39 : vector<32x1xi32>
    %c16_i32_15 = arith.constant 16 : i32
    %41 = vector.broadcast %c16_i32_15 : i32 to vector<32x1xi32>
    %42 = arith.cmpi slt, %40, %41 : vector<32x1xi32>
    %43 = arith.andi %38, %42 : vector<32x1xi1>
    %cst_16 = arith.constant 0.000000e+00 : f32
    %44 = vector.shape_cast %43 : vector<32x1xi1> to vector<32x1xi1>
    %45 = vector.broadcast %44 : vector<32x1xi1> to vector<32x16xi1>
    %46 = vector.broadcast %cst_16 : f32 to vector<32x16xf32>
    %47 = arith.select %45, %34, %46 : vector<32x16xi1>, vector<32x16xf32>
    %48 = tpu.concatenate %33, %0, %47 in 1 : vector<32x16xf32>, vector<32x16xf32>, vector<32x16xf32> -> vector<32x48xf32>
    %cst_17 = arith.constant dense<0.000000e+00> : vector<32x32xf32>
    %49 = tpu.matmul %48, %18, %cst_17 {dimension_numbers = #tpu.dot_dimension_numbers<[1], [0], [0], [1], [0, 0, 1, 1], [], []>} : vector<32x48xf32>, vector<48x32xf32>, vector<32x32xf32> -> vector<32x32xf32>
    %50 = vector.broadcast %19 : vector<1x32xf32> to vector<32x32xf32>
    %51 = arith.addf %49, %50 : vector<32x32xf32>
    %cst_18 = arith.constant 0.000000e+00 : f32
    %52 = vector.broadcast %cst_18 : f32 to vector<32x32xf32>
    %53 = arith.maximumf %51, %52 : vector<32x32xf32>
    %c0_19 = arith.constant 0 : index
    %c0_20 = arith.constant 0 : index
    %54 = vector.load %arg4[%c0_19, %c0_20] : memref<96x32xf32, #tpu.memory_space<vmem>>, vector<96x32xf32>
    %c0_21 = arith.constant 0 : index
    %c0_22 = arith.constant 0 : index
    %55 = vector.load %arg5[%c0_21, %c0_22] : memref<1x32xf32, #tpu.memory_space<vmem>>, vector<1x32xf32>
    %c1_i32_23 = arith.constant 1 : i32
    %56 = tpu.dynamic_rotate %53 by %c1_i32_23 dim 0 : vector<32x32xf32>, i32 -> vector<32x32xf32>
    %c-1_i32_24 = arith.constant -1 : i32
    %57 = vector.broadcast %c-1_i32_24 : i32 to vector<32x1xi32>
    %58 = arith.addi %17, %57 : vector<32x1xi32>
    %c0_i32_25 = arith.constant 0 : i32
    %59 = vector.broadcast %c0_i32_25 : i32 to vector<32x1xi32>
    %60 = arith.cmpi sge, %58, %59 : vector<32x1xi32>
    %c-1_i32_26 = arith.constant -1 : i32
    %61 = vector.broadcast %c-1_i32_26 : i32 to vector<32x1xi32>
    %62 = arith.addi %17, %61 : vector<32x1xi32>
    %c16_i32_27 = arith.constant 16 : i32
    %63 = vector.broadcast %c16_i32_27 : i32 to vector<32x1xi32>
    %64 = arith.cmpi slt, %62, %63 : vector<32x1xi32>
    %65 = arith.andi %60, %64 : vector<32x1xi1>
    %cst_28 = arith.constant 0.000000e+00 : f32
    %66 = vector.shape_cast %65 : vector<32x1xi1> to vector<32x1xi1>
    %67 = vector.broadcast %66 : vector<32x1xi1> to vector<32x32xi1>
    %68 = vector.broadcast %cst_28 : f32 to vector<32x32xf32>
    %69 = arith.select %67, %56, %68 : vector<32x32xi1>, vector<32x32xf32>
    %c31_i32_29 = arith.constant 31 : i32
    %70 = tpu.dynamic_rotate %53 by %c31_i32_29 dim 0 : vector<32x32xf32>, i32 -> vector<32x32xf32>
    %c1_i32_30 = arith.constant 1 : i32
    %71 = vector.broadcast %c1_i32_30 : i32 to vector<32x1xi32>
    %72 = arith.addi %17, %71 : vector<32x1xi32>
    %c0_i32_31 = arith.constant 0 : i32
    %73 = vector.broadcast %c0_i32_31 : i32 to vector<32x1xi32>
    %74 = arith.cmpi sge, %72, %73 : vector<32x1xi32>
    %c1_i32_32 = arith.constant 1 : i32
    %75 = vector.broadcast %c1_i32_32 : i32 to vector<32x1xi32>
    %76 = arith.addi %17, %75 : vector<32x1xi32>
    %c16_i32_33 = arith.constant 16 : i32
    %77 = vector.broadcast %c16_i32_33 : i32 to vector<32x1xi32>
    %78 = arith.cmpi slt, %76, %77 : vector<32x1xi32>
    %79 = arith.andi %74, %78 : vector<32x1xi1>
    %cst_34 = arith.constant 0.000000e+00 : f32
    %80 = vector.shape_cast %79 : vector<32x1xi1> to vector<32x1xi1>
    %81 = vector.broadcast %80 : vector<32x1xi1> to vector<32x32xi1>
    %82 = vector.broadcast %cst_34 : f32 to vector<32x32xf32>
    %83 = arith.select %81, %70, %82 : vector<32x32xi1>, vector<32x32xf32>
    %84 = tpu.concatenate %69, %53, %83 in 1 : vector<32x32xf32>, vector<32x32xf32>, vector<32x32xf32> -> vector<32x96xf32>
    %cst_35 = arith.constant dense<0.000000e+00> : vector<32x32xf32>
    %85 = tpu.matmul %84, %54, %cst_35 {dimension_numbers = #tpu.dot_dimension_numbers<[1], [0], [0], [1], [0, 0, 1, 1], [], []>} : vector<32x96xf32>, vector<96x32xf32>, vector<32x32xf32> -> vector<32x32xf32>
    %86 = vector.broadcast %55 : vector<1x32xf32> to vector<32x32xf32>
    %87 = arith.addf %85, %86 : vector<32x32xf32>
    %cst_36 = arith.constant 0.000000e+00 : f32
    %88 = vector.broadcast %cst_36 : f32 to vector<32x32xf32>
    %89 = arith.maximumf %87, %88 : vector<32x32xf32>
    %c0_37 = arith.constant 0 : index
    %c0_38 = arith.constant 0 : index
    %90 = vector.load %arg6[%c0_37, %c0_38] : memref<32x128xf32, #tpu.memory_space<vmem>>, vector<32x128xf32>
    %cst_39 = arith.constant dense<0.000000e+00> : vector<32x128xf32>
    %91 = tpu.matmul %89, %90, %cst_39 {dimension_numbers = #tpu.dot_dimension_numbers<[1], [0], [0], [1], [0, 0, 1, 1], [], []>} : vector<32x32xf32>, vector<32x128xf32>, vector<32x128xf32> -> vector<32x128xf32>
    %c0_40 = arith.constant 0 : index
    %c0_41 = arith.constant 0 : index
    %92 = vector.load %arg7[%c0_40, %c0_41] : memref<1x128xf32, #tpu.memory_space<vmem>>, vector<1x128xf32>
    %93 = vector.broadcast %92 : vector<1x128xf32> to vector<32x128xf32>
    %94 = arith.addf %91, %93 : vector<32x128xf32>
    %c0_42 = arith.constant 0 : index
    %c0_43 = arith.constant 0 : index
    %95 = vector.load %arg8[%c0_42, %c0_43] : memref<32x128xf32, #tpu.memory_space<vmem>>, vector<32x128xf32>
    tpu.vector_store %arg8[%c0_42, %c0_43], %94 {strides = array<i32>} : memref<32x128xf32, #tpu.memory_space<vmem>>, vector<32x128xf32>,
    return
  }
  func.func @transform_0(%arg0: i32) -> (i32, i32) {
    %c0_i32 = arith.constant 0 : i32
    %c0_i32_0 = arith.constant 0 : i32
    return %arg0, %c0_i32 : i32, i32
  }
  func.func @transform_1(%arg0: i32) -> (i32, i32) {
    %c0_i32 = arith.constant 0 : i32
    %c0_i32_0 = arith.constant 0 : i32
    %c0_i32_1 = arith.constant 0 : i32
    return %c0_i32, %c0_i32_0 : i32, i32
  }
  func.func @transform_2(%arg0: i32) -> (i32, i32) {
    %c0_i32 = arith.constant 0 : i32
    %c0_i32_0 = arith.constant 0 : i32
    %c0_i32_1 = arith.constant 0 : i32
    return %c0_i32, %c0_i32_0 : i32, i32
  }
  func.func @transform_3(%arg0: i32) -> (i32, i32) {
    %c0_i32 = arith.constant 0 : i32
    %c0_i32_0 = arith.constant 0 : i32
    %c0_i32_1 = arith.constant 0 : i32
    return %c0_i32, %c0_i32_0 : i32, i32
  }
  func.func @transform_4(%arg0: i32) -> (i32, i32) {
    %c0_i32 = arith.constant 0 : i32
    %c0_i32_0 = arith.constant 0 : i32
    %c0_i32_1 = arith.constant 0 : i32
    return %c0_i32, %c0_i32_0 : i32, i32
  }
  func.func @transform_5(%arg0: i32) -> (i32, i32) {
    %c0_i32 = arith.constant 0 : i32
    %c0_i32_0 = arith.constant 0 : i32
    %c0_i32_1 = arith.constant 0 : i32
    return %c0_i32, %c0_i32_0 : i32, i32
  }
  func.func @transform_6(%arg0: i32) -> (i32, i32) {
    %c0_i32 = arith.constant 0 : i32
    %c0_i32_0 = arith.constant 0 : i32
    %c0_i32_1 = arith.constant 0 : i32
    return %c0_i32, %c0_i32_0 : i32, i32
  }
  func.func @transform_7(%arg0: i32) -> (i32, i32) {
    %c0_i32 = arith.constant 0 : i32
    %c0_i32_0 = arith.constant 0 : i32
    return %arg0, %c0_i32 : i32, i32
  }
}

</mosaic_0001>

<bundles_post_ra>
// kernel: generator_forward.1
= control target key start
LH: loop header
LB: loop body
LE: loop exit
PB: predicated region body
PF: predicated region fallthrough
CT: control target
= control target key end

     0   :  { %12 = vsyncpa [#allocation3], 0  ;;  %s1229_s24 = smov 0   ;;  %s1460_s0 = inlined_call_operand.vmem [shape: f32[64,16], index: 0, kind: input, shape index: {}]   ;;  %s1461_s1 = inlined_call_operand.hbm [shape: f32[48,32], index: 1, kind: input, shape index: {}]   ;;  %s1462_s2 = inlined_call_operand.vmem [shape: f32[1,32], index: 2, kind: input, shape index: {}]   ;;  %s1463_s3 = inlined_call_operand.vmem [shape: f32[96,32], index: 3, kind: input, shape index: {}]   ;;  %s1464_s4 = inlined_call_operand.vmem [shape: f32[1,32], index: 4, kind: input, shape index: {}]   ;;  %s1465_s5 = inlined_call_operand.vmem [shape: f32[32,128], index: 5, kind: input, shape index: {}]   ;;  %s1466_s6 = inlined_call_operand.vmem [shape: f32[1,128], index: 6, kind: input, shape index: {}]   ;;  %s1467_s7 = inlined_call_operand.vmem [shape: f32[64,128], index: 7, kind: output, shape index: {}]  }
   0x1 LB: > { %s951_s25 = sadd.s32 4294967295, %s1181_s24   ;;  %p953_p0 = scmp.ge.s32.totalorder %s1181_s24, 1  ;;  %s1181_s24 = sphi %s1229_s24, %s18_s24  }
   0x2   : > { %p201_p1 = scmp.lt.s32.totalorder %s1181_s24, 3  ;;  %s1183_s26 = smov [#allocation2]  }
   0x3   : > { %s213_s27 = sshll.u32 %s1183_s26, 4  ;;  %p1243_p3 = scmp.eq.s32.totalorder %s951_s25, 0  ;;  %s214_s27 = int_to_ptr.vmem [resolvable:$true] %s213_s27 }
   0x4   : > { %p1237_p2 = pnand %p953_p0, %p201_p1  ;;  %s1143_s10 = scalar_lea.hbm %s1461_s1, 768 }
   0x5   : > { %s1472_s29 = scalar_select %p1243_p3, 1, 0 }
   0x6   : > { %s1471_s28 = scalar_select %p1237_p2, 1, 0 }
   0x7   : > { %p1123_p4 = pneg %p1237_p2  ;;  %p1144_p6 = scmp.ne.s32.totalorder %s1461_s1, %s1143_s10 }
   0x8   : > { %p1150_p10 = scmp.lt.u32.totalorder %s1143_s10, %s1461_s1 }
   0x9   : > { %p1251_p5 = pnand %p1243_p3, %p1123_p4 }
   0xb   : > { %p1145_p7 = pneg %p1251_p5 }
   0xd   : > { %p1146_p8 = pnand %p1145_p7, %p1144_p6 }
   0xf   : > { %p1147_p9 = pneg %p1146_p8 }
  0x11   : > { %p1152_p11 = pnand %p1150_p10, %p1147_p9 }
  0x13   : > { %1155 = shalt.err (!%p1152_p11)
}
  0x14   : > { %s1156_s15 = scalar_lea.vmem %s214_s27, 768  ;;  %p1164_p1 = scmp.lt.s32.totalorder %s214_s27, %s214_s27 }
  0x15   : > { %p1157_p12 = scmp.ne.s32.totalorder %s214_s27, %s1156_s15  ;;  %p1165_p4 = scmp.lt.s32.totalorder %s1156_s15, %s1156_s15 }
  0x17   : > { %p1159_p13 = pnand %p1157_p12, %p1145_p7  ;;  %p1166_p3 = por %p1165_p4, %p1164_p1 }
  0x19   : > { %p1160_p0 = pneg %p1159_p13 }
  0x1b   : > { %p1167_p2 = pnand %p1166_p3, %p1160_p0 }
  0x1d   : > { %1170 = shalt.err (!%p1167_p2)
}
  0x1e   : > { %s1184_s16 = smov 128   ;;  %s1185_s17 = smov 8  }
  0x1f   : > { %1126 = dma.hbm_to_vmem [thread:$0]  (!%p1251_p5), %s1461_s1, 768, %s214_s27, [#allocation3], %s1184_s16, %s1184_s16, %s1185_s17  }
  0x20   : > { %p1474_p6 = scmp.ne.s32.totalorder %s1471_s28, 0 }
  0x21   : > { %p1475_p8 = scmp.ne.s32.totalorder (!%p1474_p6), %s1472_s29, 0 }
  0x22   : > { %253 = sbr.rel (%p1474_p6) target bundleno = 953 (0x3b9), region = 48 }
  0x29   : > { %1176 = dma.done.wait (%p1475_p8), [#allocation3], 768  }
  0x2a   : > { %1178 = vsyncadd (%p1475_p8), [#allocation3], 4294966528  ;;  %s958_s20 = sshll.u32 %s951_s25, 2  ;;  %v301_v0 = vlaneseq  ;;  %s1186_s25 = smov 16   ;;  %v354_v13 = vld [vmem:[#allocation2] sm:$0xff]  ;;  %v355_v18 = vld [vmem:[#allocation2 + $0x8] sm:$0xff] }
  0x2b   : > { %p286_p2 = scmp.lt.s32.totalorder %s958_s20, 7  ;;  %v1075_v22 = vpack.c.bf16 %v355_v18, %v354_v13  ;;  %v356_v23 = vld [vmem:[#allocation2 + $0x10] sm:$0xff]  ;;  %v357_v24 = vld [vmem:[#allocation2 + $0x18] sm:$0xff]  ;;  %s1187_s27 = smov 32   ;;  %v358_v29 = vld [vmem:[#allocation2 + $0x20] sm:$0xff]  ;;  %vm467_vm5 = vcmask 130048  }
  0x2c   : > { %v1279_v1 = vshrl.u32 %v301_v0, 7  ;;  %v359_v30 = vld [vmem:[#allocation2 + $0x28] sm:$0xff]  ;;  %v1079_v32 = vpack.c.bf16 %v357_v24, %v356_v23  ;;  %vm472_vm6 = vcmask 261120   ;;  %vm483_vm7 = vcmask 392192   ;;  %v585_v62 = vld [vmem:[%s1463_s3] sm:$0xff]  ;;  %v587_v0 = vld [vmem:[%s1463_s3 + $0x10] sm:$0xff] }
  0x2d   : > { %s1477_s20 = smov (!%p286_p2, %s958_s20), 7  ;;  %1076 = vmatprep.subr.bf16.mxu0 %v1075_v22  ;;  %v1083_v36 = vpack.c.bf16 %v359_v30, %v358_v29  ;;  %v586_v63 = vld [vmem:[%s1463_s3 + $0x8] sm:$0xff]  ;;  %s1188_s16 = smov 64   ;;  %vm658_vm9 = vcmask 523264   ;;  %vm669_vm10 = vcmask 785408  }
  0x2e   : > { %v303_v2 = vadd.s32 8, %v1279_v1  ;;  %v305_v3 = vadd.s32 24, %v1279_v1  ;;  %s959_s21 = sshll.u32 %s1477_s20, 3  ;;  %vm402_vm0 = vcmp.lt.s32.totalorder %v1279_v1, 7  ;;  %vm365_vm1 = vcmp.lt.s32.totalorder %v1279_v1, 1  ;;  %1078 = vmatpush3.bf16.msra.mxu0 %v1075_v22 }
  0x2f   : > { %s289_s26 = scalar_lea.vmem %s1460_s0, %s959_s21  ;;  %1080 = vmatprep.subr.bf16.mxu0 %v1079_v32  ;;  %v310_v39 = vand.u32 15, %v1279_v1  ;;  %v304_v41 = vadd.s32 16, %v1279_v1  ;;  %s295_s30 = scalar_lea.vmem %s1467_s7, %s959_s21 }
  0x30   : > { %v317_v4 = vand.u32 15, %v303_v2  ;;  %v331_v5 = vand.u32 15, %v305_v3  ;;  %v300_v6 = vld [vmem:[%s289_s26 + $0x18] sm:$0xff]  ;;  %v297_v7 = vld [vmem:[%s289_s26] sm:$0xff]  ;;  %v298_v8 = vld [vmem:[%s289_s26 + $0x8] sm:$0xff]  ;;  %v1087_v2 = vpack.c.bf16 %v586_v63, %v585_v62 }
  0x31   : > { %445 = vrot.lane.b32.xlu1 %v300_v6, %s1186_s25  ;;  %v364_v9 = vrot.slane %v300_v6, 7  ;;  %439 = vrot.lane.b32.xlu0 %v297_v7, %s1186_s25  ;;  %v361_v10 = vrot.slane %v297_v7, 7  ;;  %v398_v11 = vrot.slane %v297_v7, 1  ;;  %v299_v12 = vld [vmem:[%s289_s26 + $0x10] sm:$0xff]  ;;  %v401_v14 = vrot.slane %v300_v6, 1  ;;  %v588_v3 = vld [vmem:[%s1463_s3 + $0x18] sm:$0xff] }
  0x32   : > { %v399_v15 = vrot.slane %v298_v8, 1  ;;  %v363_v16 = vrot.slane %v299_v12, 7  ;;  %v400_v17 = vrot.slane %v299_v12, 1  ;;  %v362_v19 = vrot.slane %v298_v8, 7  ;;  %1082 = vmatpush3.bf16.msra.mxu0 %v1079_v32  ;;  %v590_v6 = vld [vmem:[%s1463_s3 + $0x28] sm:$0xff]  ;;  %1088 = vmatprep.subr.bf16.mxu1 %v1087_v2 }
  0x33   : > { %v1295_v20 = vadd.s32 1, %v317_v4  ;;  %v1297_v21 = vadd.s32 1, %v331_v5  ;;  %v369_v28 = vsel %vm365_vm1, %v364_v9, %v361_v10  ;;  %v406_v33 = vsel %vm402_vm0, %v401_v14, %v398_v11  ;;  %1084 = vmatprep.subr.bf16.mxu0 %v1083_v36  ;;  %v589_v5 = vld [vmem:[%s1463_s3 + $0x20] sm:$0xff]  ;;  %1090 = vmatpush3.bf16.msra.mxu1 %v1087_v2 }
  0x34   : > { %v405_v25 = vsel %vm402_vm0, %v398_v11, %v399_v15  ;;  %v404_v26 = vsel %vm402_vm0, %v399_v15, %v400_v17  ;;  %v366_v27 = vsel %vm365_vm1, %v363_v16, %v364_v9  ;;  %v368_v34 = vsel %vm365_vm1, %v361_v10, %v362_v19  ;;  %v592_v9 = vld [vmem:[%s1463_s3 + $0x38] sm:$0xff]  ;;  %v593_v11 = vld [vmem:[%s1463_s3 + $0x40] sm:$0xff] }
  0x35   : > { %441 = vrot.lane.b32.xlu0 %v298_v8, %s1186_s25  ;;  %455 = vrot.lane.b32.xlu1 %v405_v25, %s1187_s27  ;;  %vm416_vm2 = vcmp.lt.s32.totalorder %v1295_v20, 16  ;;  %vm418_vm3 = vcmp.lt.s32.totalorder %v1297_v21, 16  ;;  %v367_v35 = vsel %vm365_vm1, %v362_v19, %v363_v16  ;;  %v403_v37 = vsel %vm402_vm0, %v400_v17, %v401_v14  ;;  %v591_v8 = vld [vmem:[%s1463_s3 + $0x30] sm:$0xff]  ;;  %v596_v15 = vld [vmem:[%s1463_s3 + $0x58] sm:$0xff] }
  0x36   : > { %v432_v31 = vsel %vm416_vm2, %v404_v26, 0.0  ;;  %v434_v38 = vsel %vm418_vm3, %v406_v33, 0.0  ;;  %1086 = vmatpush3.bf16.msra.mxu0 %v1083_v36  ;;  %v1328_v40 = vadd.s32 4294967295, %v310_v39  ;;  %v324_v42 = vand.u32 15, %v304_v41  ;;  %v595_v14 = vld [vmem:[%s1463_s3 + $0x50] sm:$0xff] }
  0x37   : > { %v1091_v4 = vpack.c.bf16 %v588_v3, %v587_v0  ;;  %v1095_v7 = vpack.c.bf16 %v590_v6, %v589_v5  ;;  %v1099_v10 = vpack.c.bf16 %v592_v9, %v591_v8  ;;  %v962_v16 = vld [vmem:[%s1462_s2] ss:$0 sm:$0xff]  ;;  %v1107_v17 = vpack.c.bf16 %v596_v15, %v595_v14  ;;  %v774_v6 = vld [vmem:[%s1465_s5 + $0x18] sm:$0xff] }
  0x38   : > { %vm374_vm4 = vcmp.ge.s32.totalorder %v1328_v40, 0  ;;  %v1334_v46 = vadd.s32 4294967295, %v324_v42  ;;  %v967_v8 = vld [vmem:[%s1464_s4] ss:$0 sm:$0xff] }
  0x39   : > { %443 = vrot.lane.b32.xlu0 %v299_v12, %s1186_s25  ;;  %457 = vrot.lane.b32.xlu1 %v432_v31, %s1187_s27  ;;  %v394_v45 = vsel %vm374_vm4, %v369_v28, 0.0  ;;  %v594_v12 = vld [vmem:[%s1463_s3 + $0x48] sm:$0xff] }
  0x3a   : > { %vm376_vm8 = vcmp.ge.s32.totalorder %v1334_v46, 0  ;;  %1092 = vmatprep.subr.bf16.mxu1 %v1091_v4  ;;  %v1103_v13 = vpack.c.bf16 %v594_v12, %v593_v11  ;;  %v773_v46 = vld [vmem:[%s1465_s5 + $0x10] sm:$0xff] }
  0x3b   : > { %v396_v54 = vsel %vm376_vm8, %v367_v35, 0.0  ;;  %1094 = vmatpush3.bf16.msra.mxu1 %v1091_v4  ;;  %v772_v35 = vld [vmem:[%s1465_s5 + $0x8] sm:$0xff] }
  0x3c   : > { %1096 = vmatprep.subr.bf16.mxu1 %v1095_v7 }
  0x3d   : > { %459 = vrot.lane.b32.xlu0 %v403_v37, %s1187_s27  ;;  %461 = vrot.lane.b32.xlu1 %v434_v38, %s1187_s27 }
  0x3f   : > { %1098 = vmatpush3.bf16.msra.mxu1 %v1095_v7  ;;  %v1115_v7 = vpack.c.bf16 %v774_v6, %v773_v46 }
  0x40   : > { %1100 = vmatprep.subr.bf16.mxu1 %v1099_v10 }
  0x43   : > { %1102 = vmatpush3.bf16.msra.mxu1 %v1099_v10 }
  0x44   : > { %1104 = vmatprep.subr.bf16.mxu1 %v1103_v13 }
  0x47   : > { %1106 = vmatpush3.bf16.msra.mxu1 %v1103_v13 }
  0x48   : > { %1108 = vmatprep.subr.bf16.mxu1 %v1107_v17 }
  0x4b   : > { %1110 = vmatpush3.bf16.msra.mxu1 %v1107_v17 }
  0xa3   : > { %v446_v43 = vpop.permute.xlu1 %445  ;;  %v440_v44 = vpop.permute.xlu0 %439 }
  0xa4   : > { %v468_v47 = vsel %vm467_vm5, %v394_v45, %v440_v44  ;;  %v471_v56 = vsel %vm467_vm5, %v366_v27, %v446_v43 }
  0xa7   : > { %v442_v48 = vpop.permute.xlu0 %441  ;;  %v456_v49 = vpop.permute.xlu1 %455 }
  0xa8   : > { %v473_v50 = vsel %vm472_vm6, %v468_v47, %v456_v49  ;;  %v469_v51 = vsel %vm467_vm5, %v368_v34, %v442_v48  ;;  %v771_v34 = vld [vmem:[%s1465_s5] sm:$0xff] }
  0xa9   : > { %1025 = vmatprep.mubr.msk.f32.mxu0 %vm483_vm7, %v473_v50  ;;  %v1111_v39 = vpack.c.bf16 %v772_v35, %v771_v34 }
  0xab   : > { %v444_v52 = vpop.permute.xlu0 %443  ;;  %v458_v53 = vpop.permute.xlu1 %457  ;;  %1112 = vmatprep.subr.bf16.mxu0 %v1111_v39 }
  0xac   : > { %v474_v55 = vsel %vm472_vm6, %v469_v51, %v458_v53  ;;  %v470_v57 = vsel %vm467_vm5, %v396_v54, %v444_v52 }
  0xad   : > { %1026 = vmatmul.mubr.msk.f32.vlgmr.msra.gmra.mrb[0].mxu0 %vm483_vm7, %v474_v55 }
  0xae   : > { %1114 = vmatpush3.bf16.msra.mxu0 %v1111_v39 }
  0xaf   : > { %v460_v58 = vpop.permute.xlu0 %459  ;;  %v462_v59 = vpop.permute.xlu1 %461  ;;  %1116 = vmatprep.subr.bf16.mxu0 %v1115_v7 }
  0xb0   : > { %v475_v60 = vsel %vm472_vm6, %v470_v57, %v460_v58  ;;  %v476_v61 = vsel %vm472_vm6, %v471_v56, %v462_v59 }
  0xb1   : > { %1028 = vmatprep.mubr.msk.f32.mxu0 %vm483_vm7, %v475_v60 }
  0xb2   : > { %1029 = vmatmul.mubr.msk.f32.gmra.mrb[2].mxu0 %vm483_vm7, %v476_v61 }
  0xb3   : > { %1118 = vmatpush3.bf16.msra.mxu0 %v1115_v7 }
 0x180   : > { %v1027_v18 = vpop.f32.mrb[0].mxu0 }
 0x181   : > { %v568_v19 = vadd.f32 %v1027_v18, %v962_v16  ;;  %v562_v22 = vpop.f32.mrb[1].mxu0 }
 0x182   : > { %v563_v23 = vadd.f32 %v962_v16, %v562_v22 }
 0x183   : > { %v582_v24 = vmax.f32 %v568_v19, 0.0 }
 0x184   : > { %v581_v25 = vmax.f32 %v563_v23, 0.0  ;;  %v972_v23 = vld [vmem:[%s1466_s6] ss:$0 sm:$0xff] }
 0x185   : > { %v599_v26 = vrot.slane %v582_v24, 7  ;;  %v611_v27 = vrot.slane %v582_v24, 1  ;;  %628 = vrot.lane.b32.xlu1 %v582_v24, %s1187_s27  ;;  %v1030_v28 = vpop.f32.mrb[2].mxu0 }
 0x186   : > { %v598_v29 = vrot.slane %v581_v25, 7  ;;  %v610_v30 = vrot.slane %v581_v25, 1  ;;  %v578_v31 = vadd.f32 %v1030_v28, %v962_v16  ;;  %v572_v32 = vpop.f32.mrb[3].mxu0  ;;  %626 = vrot.lane.b32.xlu0 %v581_v25, %s1187_s27 }
 0x187   : > { %v573_v33 = vadd.f32 %v962_v16, %v572_v32 }
 0x188   : > { %v584_v36 = vmax.f32 %v578_v31, 0.0  ;;  %v616_v37 = vsel %vm402_vm0, %v610_v30, %v611_v27  ;;  %v604_v38 = vsel %vm365_vm1, %v598_v29, %v599_v26 }
 0x189   : > { %v583_v41 = vmax.f32 %v573_v33, 0.0 }
 0x18a   : > { %v601_v42 = vrot.slane %v584_v36, 7  ;;  %v613_v43 = vrot.slane %v584_v36, 1  ;;  %632 = vrot.lane.b32.xlu1 %v584_v36, %s1187_s27  ;;  %642 = vrot.lane.b32.xlu0 %v616_v37, %s1188_s16 }
 0x18b   : > { %v600_v44 = vrot.slane %v583_v41, 7  ;;  %v612_v45 = vrot.slane %v583_v41, 1 }
 0x18c   : > { %v617_v47 = vsel %vm402_vm0, %v613_v43, %v610_v30  ;;  %v605_v48 = vsel %vm365_vm1, %v601_v42, %v598_v29 }
 0x18d   : > { %v615_v49 = vsel %vm402_vm0, %v611_v27, %v612_v45  ;;  %v614_v50 = vsel %vm402_vm0, %v612_v45, %v613_v43  ;;  %v602_v52 = vsel %vm365_vm1, %v600_v44, %v601_v42  ;;  %v603_v53 = vsel %vm365_vm1, %v599_v26, %v600_v44 }
 0x18e   : > { %630 = vrot.lane.b32.xlu0 %v583_v41, %s1187_s27  ;;  %v619_v51 = vsel %vm416_vm2, %v615_v49, 0.0  ;;  %v621_v54 = vsel %vm418_vm3, %v617_v47, 0.0  ;;  %v606_v57 = vsel %vm374_vm4, %v605_v48, 0.0  ;;  %v608_v63 = vsel %vm376_vm8, %v603_v53, 0.0 }
 0x18f   : > { %644 = vrot.lane.b32.xlu1 %v619_v51, %s1188_s16 }
 0x192   : > { %646 = vrot.lane.b32.xlu0 %v614_v50, %s1188_s16 }
 0x193   : > { %648 = vrot.lane.b32.xlu1 %v621_v54, %s1188_s16 }
 0x1f7   : > { %v629_v55 = vpop.permute.xlu1 %628 }
 0x1f8   : > { %v627_v56 = vpop.permute.xlu0 %626  ;;  %v655_v21 = vsel %vm472_vm6, %v604_v38, %v629_v55 }
 0x1f9   : > { %v654_v20 = vsel %vm472_vm6, %v606_v57, %v627_v56 }
 0x1fc   : > { %v633_v58 = vpop.permute.xlu1 %632  ;;  %v643_v59 = vpop.permute.xlu0 %642 }
 0x1fd   : > { %v659_v1 = vsel %vm658_vm9, %v654_v20, %v643_v59  ;;  %v657_v2 = vsel %vm472_vm6, %v602_v52, %v633_v58 }
 0x1fe   : > { %1055 = vmatprep.mubr.msk.f32.mxu1 %vm669_vm10, %v659_v1 }
 0x200   : > { %v631_v60 = vpop.permute.xlu0 %630 }
 0x201   : > { %v645_v61 = vpop.permute.xlu1 %644  ;;  %v656_v40 = vsel %vm472_vm6, %v608_v63, %v631_v60 }
 0x202   : > { %v660_v62 = vsel %vm658_vm9, %v655_v21, %v645_v61 }
 0x203   : > { %1056 = vmatmul.mubr.msk.f32.vlgmr.msra.gmra.mrb[0].mxu1 %vm669_vm10, %v660_v62 }
 0x204   : > { %v647_v0 = vpop.permute.xlu0 %646 }
 0x205   : > { %v661_v3 = vsel %vm658_vm9, %v656_v40, %v647_v0  ;;  %v649_v4 = vpop.permute.xlu1 %648 }
 0x206   : > { %v662_v5 = vsel %vm658_vm9, %v657_v2, %v649_v4  ;;  %1058 = vmatprep.mubr.msk.f32.mxu1 %vm669_vm10, %v661_v3 }
 0x207   : > { %1059 = vmatmul.mubr.msk.f32.gmra.mrb[2].mxu1 %vm669_vm10, %v662_v5 }
 0x2d6   : > { %v1057_v9 = vpop.f32.mrb[0].mxu1 }
 0x2d7   : > { %v754_v10 = vadd.f32 %v1057_v9, %v967_v8  ;;  %v748_v11 = vpop.f32.mrb[1].mxu1 }
 0x2d8   : > { %v749_v12 = vadd.f32 %v967_v8, %v748_v11 }
 0x2d9   : > { %v768_v15 = vmax.f32 %v754_v10, 0.0 }
 0x2da   : > { %v767_v13 = vmax.f32 %v749_v12, 0.0  ;;  %v1060_v14 = vpop.f32.mrb[2].mxu1 }
 0x2db   : > { %v764_v16 = vadd.f32 %v1060_v14, %v967_v8  ;;  %v758_v17 = vpop.f32.mrb[3].mxu1 }
 0x2dc   : > { %v759_v18 = vadd.f32 %v967_v8, %v758_v17  ;;  %1069 = vmatprep.mubr.msk.f32.mxu0 %vm472_vm6, %v767_v13 }
 0x2dd   : > { %1070 = vmatmul.mubr.msk.f32.vlgmr.msra.gmra.mrb[4].mxu0 %vm472_vm6, %v768_v15  ;;  %v770_v22 = vmax.f32 %v764_v16, 0.0 }
 0x2de   : > { %v769_v19 = vmax.f32 %v759_v18, 0.0 }
 0x2e0   : > { %1072 = vmatprep.mubr.msk.f32.mxu0 %vm472_vm6, %v769_v19 }
 0x2e1   : > { %1073 = vmatmul.mubr.msk.f32.gmra.mrb[6].mxu0 %vm472_vm6, %v770_v22 }
 0x3b0   : > { %v1071_v24 = vpop.f32.mrb[4].mxu0 }
 0x3b1   : > { %v860_v25 = vpop.f32.mrb[5].mxu0  ;;  %v866_v27 = vadd.f32 %v1071_v24, %v972_v23 }
 0x3b2   : > { %v861_v26 = vadd.f32 %v972_v23, %v860_v25 }
 0x3b3   : > { %880 = vst [vmem:[%s295_s30 + $0x8] sm:$0xff] %v866_v27 }
 0x3b4   : > { %879 = vst [vmem:[%s295_s30] sm:$0xff] %v861_v26  ;;  %v1074_v28 = vpop.f32.mrb[6].mxu0 }
 0x3b5   : > { %v870_v29 = vpop.f32.mrb[7].mxu0  ;;  %v876_v31 = vadd.f32 %v1074_v28, %v972_v23 }
 0x3b6   : > { %v871_v30 = vadd.f32 %v972_v23, %v870_v29 }
 0x3b7   : > { %882 = vst [vmem:[%s295_s30 + $0x18] sm:$0xff] %v876_v31 }
 0x3b8   : > { %881 = vst [vmem:[%s295_s30 + $0x10] sm:$0xff] %v871_v30 }
 0x3b9 PF: > { %s18_s24 = sadd.s32 1, %s1181_s24  }
 0x3ba   : > { %p15_p3 = scmp.ge.s32.totalorder %s18_s24, 4  }
 0x3bc   :  { %17 = sbr.rel (!%p15_p3) target bundleno = 1 (0x1), region = 83 }
 0x3c3   :  { %905 = vsyncpa [#allocation3], 1 }
 0x3c4   :  { %907 = vsyncpa [#allocation3 + $0x1], 1 }

</bundles_post_ra>
